<compile_context>
chip_gen: v7x
topology: tpu7x:2x2x1
jax: 0.10.0
libtpu: 0.0.40
codegen_flags: <defaults>
</compile_context>

<pallas_src>
import jax
import jax.numpy as jnp
from jax.experimental import pallas as pl
from jax.experimental.pallas import tpu as pltpu


_LANE = 128
# Sublane granularity covering packed dtypes: f32(8) / bf16(16) / int8,fp8(32).
_SUBLANE_GRAN = 32
# ~2 MiB per buffer -> ~8 MiB live with double-buffered in+out blocks; fits the
# default scoped-VMEM limit on v5e (16 MiB), v6e (32 MiB) and v7x (32 MiB) with
# headroom, while being large enough to amortize the ~0.35 us per-grid-step cost.
_TARGET_BLOCK_BYTES = 2 * 1024 * 1024
# Below this size, pallas_call launch/pipeline prologue dominates; selection is
# already a zero-cost view, so just return the array.
_SMALL_BYPASS_BYTES = 256 * 1024

# Prefer the widest lane-dense last dim that evenly divides the element count
# (wide unmasked `vst` bursts, fewer DMA descriptors).
_WIDTH_CANDIDATES = (4096, 2048, 1024, 512, 256, 128)


def _copy_kernel(x_ref, o_ref):
    o_ref[...] = x_ref[...]


def _tiled_copy_2d(x2):
    """Identity-copy a lane-dense (rows, width) slab; width % 128 == 0."""
    rows, width = x2.shape
    itemsize = x2.dtype.itemsize
    bytes_per_row = width * itemsize

    block_rows = max(_SUBLANE_GRAN, _TARGET_BLOCK_BYTES // bytes_per_row)
    block_rows = (block_rows // _SUBLANE_GRAN) * _SUBLANE_GRAN
    if block_rows >= rows:
        block_rows = rows  # full-extent block is always legal
    num_blocks = pl.cdiv(rows, block_rows)

    return pl.pallas_call(
        _copy_kernel,
        out_shape=jax.ShapeDtypeStruct((rows, width), x2.dtype),
        grid_spec=pltpu.PrefetchScalarGridSpec(
            num_scalar_prefetch=0,
            grid=(num_blocks,),
            in_specs=[pl.BlockSpec((block_rows, width), lambda i: (i, 0))],
            out_specs=pl.BlockSpec((block_rows, width), lambda i: (i, 0)),
        ),
        compiler_params=pltpu.CompilerParams(
            # No-op on single-TC v5e/v6e; shards the grid across both
            # TensorCores on v7x.
            dimension_semantics=("parallel",),
        ),
        cost_estimate=pl.CostEstimate(
            flops=0,
            transcendentals=0,
            bytes_accessed=2 * rows * width * itemsize,
        ),
    )(x2)


def _pallas_identity_copy(x, *, min_bytes=_SMALL_BYPASS_BYTES):
    """Materialize a bit-exact copy of x via a tiled Pallas HBM->HBM copy."""
    total = x.size
    if total == 0 or total * x.dtype.itemsize < min_bytes:
        # Tiny / empty tensor: kernel launch overhead dominates and SelectOne
        # is semantically a no-op -> skip the kernel entirely.
        return x

    orig_shape = x.shape
    width = next((w for w in _WIDTH_CANDIDATES if total % w == 0), None)
    if width is not None:
        out = _tiled_copy_2d(x.reshape(total // width, width))
        return out.reshape(orig_shape)

    # Chunked fallback for element counts not divisible by 128: pad the flat
    # view up to a multiple of 1024, run the same tiled copy, trim.  Avoids the
    # old single-full-array block that could blow VMEM for large odd shapes.
    flat = x.reshape(-1)
    padded_total = ((total + 1023) // 1024) * 1024
    flat = jnp.pad(flat, (0, padded_total - total))
    width = next(w for w in _WIDTH_CANDIDATES if padded_total % w == 0)
    out = _tiled_copy_2d(flat.reshape(padded_total // width, width))
    return out.reshape(-1)[:total].reshape(orig_shape)


class SelectOne:
    """JAX/Pallas port of the PyTorch SelectOne module.

    forward(xs) -> xs[idx].  The default path returns the selected array
    directly (zero-cost, exactly the PyTorch semantics).  `materialize=True`
    forces a freshly materialized buffer via the tiled Pallas identity copy.
    """

    def __init__(self, idx, materialize=False):
        self.idx = idx  # static, like the nn.Module attribute
        self.materialize = materialize

    def __call__(self, xs):
        x = xs[self.idx]
        if not self.materialize:
            return x
        return _pallas_identity_copy(x)


if __name__ == "__main__":
    key = jax.random.PRNGKey(0)
    k0, k1, k2, k3, k4 = jax.random.split(key, 5)

    # Small FPN-like pyramid of NCHW feature maps, as SelectOne would see.
    xs = [
        jax.random.normal(k0, (2, 4, 16, 16), dtype=jnp.float32),
        jax.random.normal(k1, (2, 4, 8, 8), dtype=jnp.float32),
        jax.random.normal(k2, (2, 4, 4, 4), dtype=jnp.float32),
    ]

    # Default path: zero-cost selection (matches the PyTorch module exactly).
    module = SelectOne(idx=1)
    out = jax.block_until_ready(module(xs))
    assert out.shape == xs[1].shape and out.dtype == xs[1].dtype
    assert bool(jnp.all(out == xs[1]))

    # Exercise the Pallas copy kernel itself (bypass disabled so it runs even
    # at these small demo sizes).
    # 1) tiny tensor -> single full-extent block.
    c0 = jax.block_until_ready(_pallas_identity_copy(xs[1], min_bytes=0))
    assert c0.shape == xs[1].shape and c0.dtype == xs[1].dtype
    assert bool(jnp.all(c0 == xs[1]))

    # 2) moderate f32 tensor -> multi-step grid of ~2 MiB lane-dense blocks.
    x_big = jax.random.normal(k3, (2, 64, 64, 128), dtype=jnp.float32)  # 4 MiB
    c1 = jax.block_until_ready(_pallas_identity_copy(x_big, min_bytes=0))
    assert bool(jnp.all(c1 == x_big))

    # 3) bf16 tensor (dtype-aware sublane granularity, packed layout).
    x_bf = jax.random.normal(k4, (2, 32, 64, 128)).astype(jnp.bfloat16)
    c2 = jax.block_until_ready(_pallas_identity_copy(x_bf, min_bytes=0))
    assert c2.dtype == jnp.bfloat16
    assert bool(jnp.all(c2 == x_bf))

    # 4) odd element count -> chunked padded fallback path.
    x_odd = jax.random.normal(k0, (3, 5, 7, 11), dtype=jnp.float32)
    c3 = jax.block_until_ready(_pallas_identity_copy(x_odd, min_bytes=0))
    assert bool(jnp.all(c3 == x_odd))

    print("KERNEL_OK")
</pallas_src>

<mosaic_0001>
module attributes {stable_mosaic.version = 11 : i64} {
  func.func @_copy_kernel(%arg0: i32, %arg1: memref<1x512xf32, #tpu.memory_space<vmem>>, %arg2: memref<1x512xf32, #tpu.memory_space<vmem>>) attributes {dimension_semantics = [#tpu.dimension_semantics<parallel>], iteration_bounds = array<i64: 1>, scalar_prefetch = 0 : i64, scratch_operands = 0 : i64, tpu.core_type = #tpu.core_type<tc>, window_params = [{transform_indices = @transform_0, window_bounds = array<i64: 1, 512>}, {transform_indices = @transform_1, window_bounds = array<i64: 1, 512>}]} {
    %c0 = arith.constant 0 : index
    %c0_0 = arith.constant 0 : index
    %0 = vector.load %arg1[%c0, %c0_0] : memref<1x512xf32, #tpu.memory_space<vmem>>, vector<1x512xf32>
    %c0_1 = arith.constant 0 : index
    %c0_2 = arith.constant 0 : index
    %1 = vector.load %arg2[%c0_1, %c0_2] : memref<1x512xf32, #tpu.memory_space<vmem>>, vector<1x512xf32>
    tpu.vector_store %arg2[%c0_1, %c0_2], %0 {strides = array<i32>} : memref<1x512xf32, #tpu.memory_space<vmem>>, vector<1x512xf32>,
    return
  }
  func.func @transform_0(%arg0: i32) -> (i32, i32) {
    %c0_i32 = arith.constant 0 : i32
    %c0_i32_0 = arith.constant 0 : i32
    return %arg0, %c0_i32 : i32, i32
  }
  func.func @transform_1(%arg0: i32) -> (i32, i32) {
    %c0_i32 = arith.constant 0 : i32
    %c0_i32_0 = arith.constant 0 : i32
    return %arg0, %c0_i32 : i32, i32
  }
}

</mosaic_0001>

<bundles_post_ra>
// kernel: tpu_custom_call.1
= control target key start
LH: loop header
LB: loop body
LE: loop exit
PB: predicated region body
PF: predicated region fallthrough
CT: control target
= control target key end

     0   :  { %6 = vsyncpa [#allocation3], 0  ;;  %s128_s0 = inlined_call_operand.hbm [shape: f32[1,512], index: 0, kind: input, shape index: {}]   ;;  %s129_s1 = inlined_call_operand.hbm [shape: f32[1,512], index: 1, kind: output, shape index: {}]  }
   0x1   :  { %7 = vsyncpa [#allocation4], 0  ;;  %s92_s6 = smov [#allocation2]   ;;  %s44_s10 = scalar_lea.hbm %s128_s0, 64 }
   0x2   :  { %s14_s7 = sshll.u32 %s92_s6, 4  ;;  %p45_p0 = scmp.ne.s32.totalorder %s128_s0, %s44_s10  ;;  %s15_s7 = int_to_ptr.vmem [resolvable:$true] %s14_s7 }
   0x3   :  { %p48_p1 = scmp.lt.u32.totalorder %s44_s10, %s128_s0 }
   0x5   :  { %p50_p2 = pnand %p48_p1, %p45_p0 }
   0x7   :  { %53 = shalt.err (!%p50_p2)
}
   0x8   :  { %s54_s15 = scalar_lea.vmem %s15_s7, 64  ;;  %p59_p4 = scmp.lt.s32.totalorder %s15_s7, %s15_s7 }
   0x9   :  { %p55_p3 = scmp.ne.s32.totalorder %s15_s7, %s54_s15  ;;  %p60_p5 = scmp.lt.s32.totalorder %s54_s15, %s54_s15 }
   0xb   :  { %p61_p6 = por %p60_p5, %p59_p4 }
   0xd   :  { %p62_p7 = pnand %p61_p6, %p55_p3 }
   0xf   :  { %65 = shalt.err (!%p62_p7)
}
  0x10   :  { %17 = dma.hbm_to_vmem [thread:$0]  %s128_s0, 64, %s15_s7, [#allocation3]  }
  0x11   :  { %88 = dma.done.wait [#allocation3], 64  }
  0x12   :  { %89 = vsyncadd [#allocation3], 4294967232  ;;  %v22_v0 = vlaneseq  ;;  %s93_s18 = smov [#allocation5]   ;;  %v21_v1 = vld [vmem:[#allocation2] sm:$0xf] }
  0x13   :  { %s33_s19 = sshll.u32 %s93_s18, 4  ;;  %s34_s19 = int_to_ptr.vmem [resolvable:$true] %s33_s19 }
  0x14   :  { %vm24_vm0 = vcmp.lt.s32.totalorder %v22_v0, 512  ;;  %s66_s20 = scalar_lea.vmem %s34_s19, 64  ;;  %p71_p9 = scmp.lt.s32.totalorder %s34_s19, %s34_s19 }
  0x15   :  { %26 = vst.msk [vmem:[#allocation5] sm:$0xf] %vm24_vm0, %v21_v1  ;;  %p67_p8 = scmp.ne.s32.totalorder %s34_s19, %s66_s20  ;;  %p72_p10 = scmp.lt.s32.totalorder %s66_s20, %s66_s20 }
  0x17   :  { %p73_p11 = por %p72_p10, %p71_p9 }
  0x19   :  { %p74_p12 = pnand %p73_p11, %p67_p8 }
  0x1b   :  { %77 = shalt.err (!%p74_p12)
}
  0x1c   :  { %s78_s0 = scalar_lea.hbm %s129_s1, 64 }
  0x1d   :  { %p79_p13 = scmp.ne.s32.totalorder %s129_s1, %s78_s0  ;;  %p82_p0 = scmp.lt.u32.totalorder %s78_s0, %s129_s1 }
  0x1f   :  { %p84_p1 = pnand %p82_p0, %p79_p13 }
  0x21   :  { %87 = shalt.err (!%p84_p1)
}
  0x22   :  { %36 = dma.vmem_to_hbm [thread:$0]  %s34_s19, 64, %s129_s1, [#allocation4]  }
  0x23   :  { %90 = dma.done.wait [#allocation4], 64  }
  0x24   :  { %91 = vsyncadd [#allocation4], 4294967232 }
  0x25   :  { %40 = vsyncpa [#allocation3], 1 }
  0x26   :  { %41 = vsyncpa [#allocation4], 1 }

</bundles_post_ra>
